<compile_context>
chip_gen: v7x
topology: tpu7x:2x2x1
jax: 0.10.0
libtpu: 0.0.40
codegen_flags: <defaults>
</compile_context>

<pallas_src>
import functools

import jax
import jax.numpy as jnp
from jax.experimental import pallas as pl
from jax.experimental.pallas import tpu as pltpu

Y_FDIM = 20   # input features
H1 = 15       # fc1 out features
H2 = 10       # fc2 out features


# ---------------------------------------------------------------------------
# Kernel bodies
# ---------------------------------------------------------------------------
def _net4_kernel_t(x_ref, w1_ref, b1_ref, w2_ref, b2_ref, o_ref, *, approx):
    """Lane-dense (batch-minor) body: batch is the last (lane) axis.

    x_ref: (Y_FDIM, tb)   w1_ref: (H1, Y_FDIM)   b1_ref: (H1, 1)
    w2_ref: (H2, H1)      b2_ref: (H2, 1)        o_ref: (H2, tb)
    """
    h = jnp.dot(w1_ref[...], x_ref[...], preferred_element_type=jnp.float32)
    h = h + b1_ref[...]                      # (H1, tb) + (H1, 1)
    h = jnp.maximum(h, 0.2 * h)              # LeakyReLU(0.2): single vmax
    z = jnp.dot(w2_ref[...], h, preferred_element_type=jnp.float32)  # f32 x f32
    z = z + b2_ref[...]                      # (H2, tb) + (H2, 1)
    # sigmoid(z) = 1 / (1 + exp(-z)): exp on EUP; approx rcp also on EUP slot.
    o_ref[...] = pl.reciprocal(1.0 + jnp.exp(-z), approx=approx).astype(o_ref.dtype)


def _net4_kernel_bm(x_ref, w1_ref, b1_ref, w2_ref, b2_ref, o_ref, *, approx):
    """Batch-major body (module-native layout): batch on the sublane axis.

    x_ref: (tb, Y_FDIM)   w1_ref: (Y_FDIM, H1)   b1_ref: (1, H1)
    w2_ref: (H1, H2)      b2_ref: (1, H2)        o_ref: (tb, H2)
    """
    h = jnp.dot(x_ref[...], w1_ref[...], preferred_element_type=jnp.float32)
    h = h + b1_ref[...]
    h = jnp.maximum(h, 0.2 * h)
    z = jnp.dot(h, w2_ref[...], preferred_element_type=jnp.float32)  # f32 x f32
    z = z + b2_ref[...]
    o_ref[...] = pl.reciprocal(1.0 + jnp.exp(-z), approx=approx).astype(o_ref.dtype)


# ---------------------------------------------------------------------------
# Tiling / cost helpers
# ---------------------------------------------------------------------------
def _round_up(x, m):
    return -(-x // m) * m


def _choose_tile(batch, tile_b, granule, min_steps):
    """Batch tile: multiple of `granule`, large (amortize ~0.35us/grid step),
    but capped so the grid has >= min_steps steps (v7x megacore / pipelining)."""
    if batch <= 2 * granule:
        return batch                                   # single full-extent block
    cap = _round_up(pl.cdiv(batch, max(min_steps, 1)), granule)
    t = min(tile_b, cap, batch)
    return max(granule, (t // granule) * granule)


def _cost(batch, x_itemsize, out_itemsize, approx):
    return pl.CostEstimate(
        flops=2 * batch * (Y_FDIM * H1 + H1 * H2) + 3 * batch * (H1 + H2),
        transcendentals=batch * H2 * (2 if approx else 1),   # exp (+ approx rcp)
        bytes_accessed=(batch * Y_FDIM * x_itemsize           # x read
                        + batch * H2 * out_itemsize           # y write
                        + (Y_FDIM * H1 + H1 * H2) * x_itemsize
                        + (H1 + H2) * 4))                     # weights + biases


# ---------------------------------------------------------------------------
# Public wrappers
# ---------------------------------------------------------------------------
@functools.partial(
    jax.jit, static_argnames=("tile_b", "min_steps", "out_dtype", "approx_sigmoid"))
def net4_forward_t(x_t, w1, b1, w2, b2, *, tile_b=16384, min_steps=4,
                   out_dtype=jnp.float32, approx_sigmoid=True):
    """Lane-dense perf path: x_t is (Y_FDIM, B) = x.T, returns y.T = (H2, B).

    Weights use the PyTorch layout (out, in).  Use this path when the producer
    can emit x batch-minor / the consumer takes y^T.
    """
    fdim, B = x_t.shape
    assert fdim == Y_FDIM
    w1 = w1.astype(x_t.dtype)                         # (H1, Y_FDIM): tiny, resident
    b1 = b1.reshape(H1, 1).astype(jnp.float32)
    w2 = w2.astype(jnp.float32)                       # keep 2nd (tiny) matmul f32:
    b2 = b2.reshape(H2, 1).astype(jnp.float32)        # no per-tile h cast needed

    tb = _choose_tile(B, tile_b, granule=128, min_steps=min_steps)
    grid = (pl.cdiv(B, tb),)

    return pl.pallas_call(
        functools.partial(_net4_kernel_t, approx=approx_sigmoid),
        out_shape=jax.ShapeDtypeStruct((H2, B), out_dtype),
        grid=grid,
        in_specs=[
            pl.BlockSpec((Y_FDIM, tb), lambda i: (0, i)),   # x^T streamed per tile
            pl.BlockSpec((H1, Y_FDIM), lambda i: (0, 0)),   # w1 VMEM-resident
            pl.BlockSpec((H1, 1),      lambda i: (0, 0)),   # b1 VMEM-resident
            pl.BlockSpec((H2, H1),     lambda i: (0, 0)),   # w2 VMEM-resident
            pl.BlockSpec((H2, 1),      lambda i: (0, 0)),   # b2 VMEM-resident
        ],
        out_specs=pl.BlockSpec((H2, tb), lambda i: (0, i)),
        compiler_params=pltpu.CompilerParams(
            dimension_semantics=("parallel",),       # megacore shards batch tiles
            vmem_limit_bytes=32 * 1024 * 1024,       # lane-dense blocks are tiny
        ),
        cost_estimate=_cost(B, jnp.dtype(x_t.dtype).itemsize,
                            jnp.dtype(out_dtype).itemsize, approx_sigmoid),
    )(x_t, w1, b1, w2, b2)


@functools.partial(
    jax.jit, static_argnames=("tile_b", "min_steps", "out_dtype", "approx_sigmoid"))
def net4_forward(x, w1, b1, w2, b2, *, tile_b=8192, min_steps=4,
                 out_dtype=jnp.float32, approx_sigmoid=True):
    """Module-semantics path: x is (B, Y_FDIM), returns (B, H2).

    Keeps the PyTorch layout end to end (no hidden wrapper transposes = no
    extra HBM pass); prefer net4_forward_t when you control activation layout.
    """
    B, fdim = x.shape
    assert fdim == Y_FDIM
    w1t = jnp.transpose(w1).astype(x.dtype)           # (Y_FDIM, H1): tiny
    b1r = b1.reshape(1, H1).astype(jnp.float32)
    w2t = jnp.transpose(w2).astype(jnp.float32)       # (H1, H2)
    b2r = b2.reshape(1, H2).astype(jnp.float32)

    tb = _choose_tile(B, tile_b, granule=8, min_steps=min_steps)
    grid = (pl.cdiv(B, tb),)

    return pl.pallas_call(
        functools.partial(_net4_kernel_bm, approx=approx_sigmoid),
        out_shape=jax.ShapeDtypeStruct((B, H2), out_dtype),
        grid=grid,
        in_specs=[
            pl.BlockSpec((tb, Y_FDIM), lambda i: (i, 0)),
            pl.BlockSpec((Y_FDIM, H1), lambda i: (0, 0)),
            pl.BlockSpec((1, H1),      lambda i: (0, 0)),
            pl.BlockSpec((H1, H2),     lambda i: (0, 0)),
            pl.BlockSpec((1, H2),      lambda i: (0, 0)),
        ],
        out_specs=pl.BlockSpec((tb, H2), lambda i: (i, 0)),
        compiler_params=pltpu.CompilerParams(
            dimension_semantics=("parallel",),
            # Lane-padded (tb,20)/(tb,10) f32 blocks at tb=8192 are ~4 MiB each,
            # double-buffered -> ~17 MiB total; 48 MiB is safe on v5e/v6e/v7x.
            vmem_limit_bytes=48 * 1024 * 1024,
        ),
        cost_estimate=_cost(B, jnp.dtype(x.dtype).itemsize,
                            jnp.dtype(out_dtype).itemsize, approx_sigmoid),
    )(x, w1t, b1r, w2t, b2r)


# ---------------------------------------------------------------------------
# Reference / init (PyTorch conventions: weight (out, in), y = x @ W^T + b)
# ---------------------------------------------------------------------------
def init_params(key):
    # torch.nn.Linear default init: U(-1/sqrt(fan_in), 1/sqrt(fan_in)).
    k1, k2, k3, k4 = jax.random.split(key, 4)
    bound1 = 1.0 / (Y_FDIM ** 0.5)
    bound2 = 1.0 / (H1 ** 0.5)
    w1 = jax.random.uniform(k1, (H1, Y_FDIM), jnp.float32, -bound1, bound1)
    b1 = jax.random.uniform(k2, (H1,), jnp.float32, -bound1, bound1)
    w2 = jax.random.uniform(k3, (H2, H1), jnp.float32, -bound2, bound2)
    b2 = jax.random.uniform(k4, (H2,), jnp.float32, -bound2, bound2)
    return w1, b1, w2, b2


def reference_forward(x, w1, b1, w2, b2):
    h = x @ w1.T + b1
    h = jnp.where(h >= 0.0, h, 0.2 * h)
    z = h @ w2.T + b2
    return jax.nn.sigmoid(z)


if __name__ == "__main__":
    key = jax.random.PRNGKey(0)
    kx, kx2, kp = jax.random.split(key, 3)
    w1, b1, w2, b2 = init_params(kp)

    # --- small-shape correctness, exact-sigmoid path, both layouts ----------
    B = 8
    x = jax.random.normal(kx, (B, Y_FDIM), dtype=jnp.float32)
    ref = reference_forward(x, w1, b1, w2, b2)

    out_bm = jax.block_until_ready(
        net4_forward(x, w1, b1, w2, b2, approx_sigmoid=False))
    assert out_bm.shape == (B, H2)
    assert jnp.allclose(out_bm, ref, atol=1e-5, rtol=1e-5)

    out_t = jax.block_until_ready(
        net4_forward_t(x.T, w1, b1, w2, b2, approx_sigmoid=False))
    assert out_t.shape == (H2, B)
    assert jnp.allclose(out_t.T, ref, atol=1e-5, rtol=1e-5)

    # --- default perf path (approx reciprocal), multi-tile ragged grids -----
    B2 = 1000                        # not a multiple of the tile -> ragged tail
    x2 = jax.random.normal(kx2, (B2, Y_FDIM), dtype=jnp.float32)
    ref2 = reference_forward(x2, w1, b1, w2, b2)

    out2_bm = jax.block_until_ready(net4_forward(x2, w1, b1, w2, b2))
    assert out2_bm.shape == (B2, H2)
    assert jnp.allclose(out2_bm, ref2, atol=3e-3, rtol=3e-3)

    out2_t = jax.block_until_ready(net4_forward_t(x2.T, w1, b1, w2, b2))
    assert out2_t.shape == (H2, B2)
    assert jnp.allclose(out2_t.T, ref2, atol=3e-3, rtol=3e-3)

    # --- bf16-in / bf16-out lane-dense path (producer already stores bf16) --
    x2_bf16_t = x2.T.astype(jnp.bfloat16)     # stands in for a bf16 producer
    out_bf16 = jax.block_until_ready(
        net4_forward_t(x2_bf16_t, w1, b1, w2, b2, out_dtype=jnp.bfloat16))
    assert out_bf16.dtype == jnp.bfloat16
    assert jnp.allclose(out_bf16.T.astype(jnp.float32), ref2, atol=2e-2, rtol=2e-2)

    print("KERNEL_OK")
</pallas_src>

<mosaic_0001>
module attributes {stable_mosaic.version = 11 : i64} {
  func.func @_net4_kernel_bm(%arg0: i32, %arg1: memref<8x20xf32, #tpu.memory_space<vmem>>, %arg2: memref<20x15xf32, #tpu.memory_space<vmem>>, %arg3: memref<1x15xf32, #tpu.memory_space<vmem>>, %arg4: memref<15x10xf32, #tpu.memory_space<vmem>>, %arg5: memref<1x10xf32, #tpu.memory_space<vmem>>, %arg6: memref<8x10xf32, #tpu.memory_space<vmem>>) attributes {dimension_semantics = [#tpu.dimension_semantics<parallel>], iteration_bounds = array<i64: 1>, scalar_prefetch = 0 : i64, scratch_operands = 0 : i64, tpu.core_type = #tpu.core_type<tc>, window_params = [{transform_indices = @transform_0, window_bounds = array<i64: 8, 20>}, {pipeline_mode = #tpu.pipeline_mode<synchronous>, transform_indices = @transform_1, window_bounds = array<i64: 20, 15>}, {pipeline_mode = #tpu.pipeline_mode<synchronous>, transform_indices = @transform_2, window_bounds = array<i64: 1, 15>}, {pipeline_mode = #tpu.pipeline_mode<synchronous>, transform_indices = @transform_3, window_bounds = array<i64: 15, 10>}, {pipeline_mode = #tpu.pipeline_mode<synchronous>, transform_indices = @transform_4, window_bounds = array<i64: 1, 10>}, {transform_indices = @transform_5, window_bounds = array<i64: 8, 10>}]} {
    %c0 = arith.constant 0 : index
    %c0_0 = arith.constant 0 : index
    %0 = vector.load %arg1[%c0, %c0_0] : memref<8x20xf32, #tpu.memory_space<vmem>>, vector<8x20xf32>
    %c0_1 = arith.constant 0 : index
    %c0_2 = arith.constant 0 : index
    %1 = vector.load %arg2[%c0_1, %c0_2] : memref<20x15xf32, #tpu.memory_space<vmem>>, vector<20x15xf32>
    %cst = arith.constant dense<0.000000e+00> : vector<8x15xf32>
    %2 = tpu.matmul %0, %1, %cst {dimension_numbers = #tpu.dot_dimension_numbers<[1], [0], [0], [1], [0, 0, 1, 1], [], []>} : vector<8x20xf32>, vector<20x15xf32>, vector<8x15xf32> -> vector<8x15xf32>
    %c0_3 = arith.constant 0 : index
    %c0_4 = arith.constant 0 : index
    %3 = vector.load %arg3[%c0_3, %c0_4] : memref<1x15xf32, #tpu.memory_space<vmem>>, vector<1x15xf32>
    %4 = vector.broadcast %3 : vector<1x15xf32> to vector<8x15xf32>
    %5 = arith.addf %2, %4 : vector<8x15xf32>
    %cst_5 = arith.constant 2.000000e-01 : f32
    %6 = vector.broadcast %cst_5 : f32 to vector<8x15xf32>
    %7 = arith.mulf %6, %5 : vector<8x15xf32>
    %8 = arith.maximumf %5, %7 : vector<8x15xf32>
    %c0_6 = arith.constant 0 : index
    %c0_7 = arith.constant 0 : index
    %9 = vector.load %arg4[%c0_6, %c0_7] : memref<15x10xf32, #tpu.memory_space<vmem>>, vector<15x10xf32>
    %cst_8 = arith.constant dense<0.000000e+00> : vector<8x10xf32>
    %10 = tpu.matmul %8, %9, %cst_8 {dimension_numbers = #tpu.dot_dimension_numbers<[1], [0], [0], [1], [0, 0, 1, 1], [], []>} : vector<8x15xf32>, vector<15x10xf32>, vector<8x10xf32> -> vector<8x10xf32>
    %c0_9 = arith.constant 0 : index
    %c0_10 = arith.constant 0 : index
    %11 = vector.load %arg5[%c0_9, %c0_10] : memref<1x10xf32, #tpu.memory_space<vmem>>, vector<1x10xf32>
    %12 = vector.broadcast %11 : vector<1x10xf32> to vector<8x10xf32>
    %13 = arith.addf %10, %12 : vector<8x10xf32>
    %cst_11 = arith.constant 0.000000e+00 : f32
    %14 = vector.broadcast %cst_11 : f32 to vector<8x10xf32>
    %15 = arith.subf %14, %13 : vector<8x10xf32>
    %16 = math.exp %15 : vector<8x10xf32>
    %cst_12 = arith.constant 1.000000e+00 : f32
    %17 = vector.broadcast %cst_12 : f32 to vector<8x10xf32>
    %18 = arith.addf %17, %16 : vector<8x10xf32>
    %19 = tpu.reciprocal %18 : vector<8x10xf32> -> vector<8x10xf32>
    %c0_13 = arith.constant 0 : index
    %c0_14 = arith.constant 0 : index
    %20 = vector.load %arg6[%c0_13, %c0_14] : memref<8x10xf32, #tpu.memory_space<vmem>>, vector<8x10xf32>
    tpu.vector_store %arg6[%c0_13, %c0_14], %19 {strides = array<i32>} : memref<8x10xf32, #tpu.memory_space<vmem>>, vector<8x10xf32>,
    return
  }
  func.func @transform_0(%arg0: i32) -> (i32, i32) {
    %c0_i32 = arith.constant 0 : i32
    %c0_i32_0 = arith.constant 0 : i32
    return %arg0, %c0_i32 : i32, i32
  }
  func.func @transform_1(%arg0: i32) -> (i32, i32) {
    %c0_i32 = arith.constant 0 : i32
    %c0_i32_0 = arith.constant 0 : i32
    %c0_i32_1 = arith.constant 0 : i32
    return %c0_i32, %c0_i32_0 : i32, i32
  }
  func.func @transform_2(%arg0: i32) -> (i32, i32) {
    %c0_i32 = arith.constant 0 : i32
    %c0_i32_0 = arith.constant 0 : i32
    %c0_i32_1 = arith.constant 0 : i32
    return %c0_i32, %c0_i32_0 : i32, i32
  }
  func.func @transform_3(%arg0: i32) -> (i32, i32) {
    %c0_i32 = arith.constant 0 : i32
    %c0_i32_0 = arith.constant 0 : i32
    %c0_i32_1 = arith.constant 0 : i32
    return %c0_i32, %c0_i32_0 : i32, i32
  }
  func.func @transform_4(%arg0: i32) -> (i32, i32) {
    %c0_i32 = arith.constant 0 : i32
    %c0_i32_0 = arith.constant 0 : i32
    %c0_i32_1 = arith.constant 0 : i32
    return %c0_i32, %c0_i32_0 : i32, i32
  }
  func.func @transform_5(%arg0: i32) -> (i32, i32) {
    %c0_i32 = arith.constant 0 : i32
    %c0_i32_0 = arith.constant 0 : i32
    return %arg0, %c0_i32 : i32, i32
  }
}

</mosaic_0001>

<bundles_post_ra>
// kernel: net4_forward.1
= control target key start
LH: loop header
LB: loop body
LE: loop exit
PB: predicated region body
PF: predicated region fallthrough
CT: control target
= control target key end

     0   :  { %v289_v2 = vmov 0.0|0.0   ;;  %vm290_vm0 = vmmov 0   ;;  %v291_v4 = vmov 0.0   ;;  %s360_s0 = inlined_call_operand.vmem [shape: f32[8,20], index: 0, kind: input, shape index: {}]   ;;  %s361_s1 = inlined_call_operand.vmem [shape: f32[20,15], index: 1, kind: input, shape index: {}]   ;;  %s362_s2 = inlined_call_operand.vmem [shape: f32[1,15], index: 2, kind: input, shape index: {}]   ;;  %s363_s3 = inlined_call_operand.vmem [shape: f32[15,10], index: 3, kind: input, shape index: {}]   ;;  %s364_s4 = inlined_call_operand.vmem [shape: f32[1,10], index: 4, kind: input, shape index: {}]   ;;  %s365_s5 = inlined_call_operand.hbm [shape: f32[8,10], index: 5, kind: output, shape index: {}]  }
   0x1   :  { %v22_v0 = vld [vmem:[%s361_s1] sm:$0xff]  ;;  %v23_v1 = vld [vmem:[%s361_s1 + $0x8] sm:$0xff]  ;;  %249 = vmatprep.subr.bf16.mxu0 %v289_v2  ;;  %252 = vmatprep.subr.bf16.mxu1 %v289_v2 }
   0x2   :  { %v250_v3 = vpack.c.bf16 %v23_v1, %v22_v0  ;;  %239 = vmatprep.mubr.msk.f32.mxu0 %vm290_vm0, %v291_v4  ;;  %246 = vmatprep.mubr.msk.f32.mxu1 %vm290_vm0, %v291_v4 }
   0x3   :  { %10 = vsyncpa [#allocation3], 0  ;;  %v24_v5 = vld [vmem:[%s361_s1 + $0x10] sm:$0xf]  ;;  %vm36_vm1 = vcmask 1043456   ;;  %v21_v6 = vld [vmem:[%s360_s0] sm:$0xff] }
   0x4   :  { %251 = vmatpush3.bf16.msra.mxu0 %v250_v3  ;;  %vm32_vm2 = vcmask 162816   ;;  %v112_v7 = vld [vmem:[%s363_s3] sm:$0xff]  ;;  %v113_v8 = vld [vmem:[%s363_s3 + $0x8] sm:$0x7f]  ;;  %vm125_vm3 = vcmask 1046528   ;;  %vm292_vm4 = vmmov 1  }
   0x5   :  { %237 = vmatprep.subr.mxu0 %v291_v4  ;;  %v253_v9 = vpack.c.bf16 %v113_v8, %v112_v7  ;;  %vm254_vm5 = vmpackc.low %vm125_vm3, %vm292_vm4  ;;  %v220_v10 = vld [vmem:[%s362_s2] ss:$0 sm:$0xff]  ;;  %vm121_vm6 = vcmask 121856   ;;  %s293_s2 = smov [#allocation2]   ;;  %vm204_vm7 = vcmask 80896  }
   0x6   :  { %v223_v16 = vld [vmem:[%s364_s4] ss:$0 sm:$0xff]  ;;  %s212_s3 = sshll.u32 %s293_s2, 4  ;;  %s213_s3 = int_to_ptr.vmem [resolvable:$true] %s212_s3 }
   0x7   :  { %255 = vmatpush3.bf16.msk.msra.mxu1 %vm254_vm5, %v253_v9  ;;  %s265_s7 = scalar_lea.vmem %s213_s3, 128  ;;  %p270_p1 = scmp.lt.s32.totalorder %s213_s3, %s213_s3 }
   0x8   :  { %238 = vmatpush3.msk.msra.mxu0 %vm36_vm1, %v24_v5  ;;  %p266_p0 = scmp.ne.s32.totalorder %s213_s3, %s265_s7  ;;  %p271_p2 = scmp.lt.s32.totalorder %s265_s7, %s265_s7 }
   0x9   :  { %240 = vmatmul.mubr.msk.f32.vlgmr.msra.gmra.mrb[0].mxu0 %vm32_vm2, %v21_v6 }
   0xa   :  { %p272_p3 = por %p271_p2, %p270_p1 }
   0xc   :  { %p273_p4 = pnand %p272_p3, %p266_p0 }
  0xdc   :  { %v106_v11 = vpop.f32.mrb[0].mxu0 }
  0xdd   :  { %v107_v12 = vadd.f32 %v220_v10, %v106_v11  ;;  %v241_v13 = vpop.f32.mrb[1].mxu0 }
  0xdf   :  { %v110_v14 = vmul.f32 0.2, %v107_v12 }
  0xe1   :  { %v111_v15 = vmax.f32 %v107_v12, %v110_v14 }
  0xe3   :  { %247 = vmatmul.mubr.msk.f32.vlgmr.msra.gmra.mrb[0].mxu1 %vm121_vm6, %v111_v15 }
 0x1b6   :  { %v195_v17 = vpop.f32.mrb[0].mxu1 }
 0x1b7   :  { %v196_v18 = vadd.f32 %v223_v16, %v195_v17  ;;  %v248_v19 = vpop.f32.mrb[1].mxu1 }
 0x1b9   :  { %v199_v20 = vsub.f32 0.0, %v196_v18 }
 0x1bb   :  { %v200_v21 = vmul.f32 1.442695, %v199_v20 }
 0x1bd   :  { %261 = vpow2.f32 %v200_v21 }
 0x1c7   :  { %v262_v22 = vpop.eup %261 }
 0x1c8   :  { %v202_v23 = vadd.f32 1.0, %v262_v22 }
 0x1ca   :  { %263 = vrcp.f32 %v202_v23 }
 0x1d4   :  { %v264_v24 = vpop.eup %263 }
 0x1d5   :  { %205 = vst.msk [vmem:[#allocation2] sm:$0xff] %vm204_vm7, %v264_v24 }
 0x1d6   :  { %276 = shalt.err (!%p273_p4)
}
 0x1d7   :  { %s277_s9 = scalar_lea.hbm %s365_s5, 128 }
 0x1d8   :  { %p278_p5 = scmp.ne.s32.totalorder %s365_s5, %s277_s9  ;;  %p281_p6 = scmp.lt.u32.totalorder %s277_s9, %s365_s5 }
 0x1da   :  { %p283_p7 = pnand %p281_p6, %p278_p5 }
 0x1dc   :  { %286 = shalt.err (!%p283_p7)
}
 0x1dd   :  { %215 = dma.vmem_to_hbm [thread:$0]  %s213_s3, 128, %s365_s5, [#allocation3]  }
 0x1de   :  { %287 = dma.done.wait [#allocation3], 128  }
 0x1df   :  { %288 = vsyncadd [#allocation3], 4294967168 }
 0x1e0   :  { %219 = vsyncpa [#allocation3], 1 }

</bundles_post_ra>
